<compile_context>
chip_gen: v5e
topology: v5e:2x2
jax: 0.10.0
libtpu: 0.0.40
codegen_flags: <defaults>
</compile_context>

<pallas_src>
import math
import jax
import jax.numpy as jnp
from jax.experimental import pallas as pl
from jax.experimental.pallas import tpu as pltpu

T = 1.0          # PyTorch module uses T = 1 -> division is a no-op (removed).
HIDDEN = 32
BATCH_TILE = 512  # rows of x per grid step on large batches


def pi_model_kernel(x_ref, w1_ref, b1_ref, w2_ref, b2_ref, w3_ref, b3_ref, o_ref):
    # x / weights arrive as bf16; biases and all elementwise math are f32.
    x = x_ref[...]

    # l1 + ReLU
    h1 = jnp.dot(x, w1_ref[...], preferred_element_type=jnp.float32) + b1_ref[...]
    h1 = jnp.maximum(h1, 0.0)

    # l2 + ReLU
    h2 = jnp.dot(h1.astype(jnp.bfloat16), w2_ref[...],
                 preferred_element_type=jnp.float32) + b2_ref[...]
    h2 = jnp.maximum(h2, 0.0)

    # l3 (T == 1.0 so the input scaling h2 / T is a no-op; if T != 1, fold 1/T
    # into w3 on the host), then softmax over the last dim in f32.
    logits = jnp.dot(h2.astype(jnp.bfloat16), w3_ref[...],
                     preferred_element_type=jnp.float32) + b3_ref[...]
    m = jnp.max(logits, axis=-1, keepdims=True)
    e = jnp.exp(logits - m)
    denom = jnp.sum(e, axis=-1, keepdims=True)
    o_ref[...] = (e * pl.reciprocal(denom, approx=True)).astype(o_ref.dtype)


def pi_model_forward(x, params, *, batch_tile=BATCH_TILE):
    w1, b1, w2, b2, w3, b3 = params
    batch, d_in = x.shape
    d_out = w3.shape[1]

    tb = min(batch, batch_tile)
    num_tiles = pl.cdiv(batch, tb)  # partial last tile is masked by Pallas

    # bf16 MXU inputs; f32 biases (added post-matmul in f32).
    x_bf = x.astype(jnp.bfloat16)
    w1_bf = w1.astype(jnp.bfloat16)
    w2_bf = w2.astype(jnp.bfloat16)
    w3_bf = w3.astype(jnp.bfloat16)

    # Resident operands: same block every grid step -> fetched once.
    def resident(a):
        return pl.BlockSpec(a.shape, lambda i: (0,) * a.ndim)

    return pl.pallas_call(
        pi_model_kernel,
        out_shape=jax.ShapeDtypeStruct((batch, d_out), jnp.float32),
        grid_spec=pltpu.PrefetchScalarGridSpec(
            num_scalar_prefetch=0,
            grid=(num_tiles,),
            in_specs=[
                # x streams with the grid (default double-buffering hides the
                # DMA behind the tiny per-tile compute; bump to pl.Buffered(3)
                # only if a profile shows exposed x DMA).
                pl.BlockSpec((tb, d_in), lambda i: (i, 0)),
                resident(w1_bf), resident(b1),
                resident(w2_bf), resident(b2),
                resident(w3_bf), resident(b3),
            ],
            out_specs=pl.BlockSpec((tb, d_out), lambda i: (i, 0)),
        ),
        compiler_params=pltpu.CompilerParams(
            dimension_semantics=("parallel",),        # 2x on v7x dual-TC
            vmem_limit_bytes=32 * 1024 * 1024,        # safe on v7x's 64 MiB VMEM
        ),
    )(x_bf, w1_bf, b1, w2_bf, b2, w3_bf, b3)


def init_linear(key, d_in, d_out):
    # Deterministic init mimicking torch.nn.Linear default:
    # U(-1/sqrt(fan_in), 1/sqrt(fan_in)).
    kw, kb = jax.random.split(key)
    bound = 1.0 / math.sqrt(d_in)
    w = jax.random.uniform(kw, (d_in, d_out), jnp.float32, -bound, bound)
    b = jax.random.uniform(kb, (1, d_out), jnp.float32, -bound, bound)
    return w, b


if __name__ == "__main__":
    d_in, d_out, batch = 16, 4, 8

    key = jax.random.PRNGKey(0)
    kx, k1, k2, k3 = jax.random.split(key, 4)

    x = jax.random.normal(kx, (batch, d_in), jnp.float32)
    w1, b1 = init_linear(k1, d_in, HIDDEN)
    w2, b2 = init_linear(k2, HIDDEN, HIDDEN)
    w3, b3 = init_linear(k3, HIDDEN, d_out)
    params = (w1, b1, w2, b2, w3, b3)

    out = pi_model_forward(x, params)
    out = jax.block_until_ready(out)

    # Reference check in plain JAX (f32).  Tolerance loosened vs the f32-only
    # kernel because the optimized kernel uses bf16 MXU inputs and the EUP
    # approximate reciprocal in the softmax epilogue.
    h1 = jnp.maximum(x @ w1 + b1, 0.0)
    h2 = jnp.maximum(h1 @ w2 + b2, 0.0)
    ref = jax.nn.softmax((h2 / T) @ w3 + b3, axis=-1)
    assert out.shape == (batch, d_out)
    assert jnp.allclose(out, ref, atol=2e-2), "mismatch vs reference"
    assert jnp.allclose(jnp.sum(out, axis=-1), 1.0, atol=1e-2)

    print("KERNEL_OK")
</pallas_src>

<mosaic_0001>
module attributes {stable_mosaic.version = 11 : i64} {
  func.func @pi_model_kernel(%arg0: i32, %arg1: memref<8x16xbf16, #tpu.memory_space<vmem>>, %arg2: memref<16x32xbf16, #tpu.memory_space<vmem>>, %arg3: memref<1x32xf32, #tpu.memory_space<vmem>>, %arg4: memref<32x32xbf16, #tpu.memory_space<vmem>>, %arg5: memref<1x32xf32, #tpu.memory_space<vmem>>, %arg6: memref<32x4xbf16, #tpu.memory_space<vmem>>, %arg7: memref<1x4xf32, #tpu.memory_space<vmem>>, %arg8: memref<8x4xf32, #tpu.memory_space<vmem>>) attributes {dimension_semantics = [#tpu.dimension_semantics<parallel>], iteration_bounds = array<i64: 1>, scalar_prefetch = 0 : i64, scratch_operands = 0 : i64, tpu.core_type = #tpu.core_type<tc>, window_params = [{transform_indices = @transform_0, window_bounds = array<i64: 8, 16>}, {pipeline_mode = #tpu.pipeline_mode<synchronous>, transform_indices = @transform_1, window_bounds = array<i64: 16, 32>}, {pipeline_mode = #tpu.pipeline_mode<synchronous>, transform_indices = @transform_2, window_bounds = array<i64: 1, 32>}, {pipeline_mode = #tpu.pipeline_mode<synchronous>, transform_indices = @transform_3, window_bounds = array<i64: 32, 32>}, {pipeline_mode = #tpu.pipeline_mode<synchronous>, transform_indices = @transform_4, window_bounds = array<i64: 1, 32>}, {pipeline_mode = #tpu.pipeline_mode<synchronous>, transform_indices = @transform_5, window_bounds = array<i64: 32, 4>}, {pipeline_mode = #tpu.pipeline_mode<synchronous>, transform_indices = @transform_6, window_bounds = array<i64: 1, 4>}, {transform_indices = @transform_7, window_bounds = array<i64: 8, 4>}]} {
    %c0 = arith.constant 0 : index
    %c0_0 = arith.constant 0 : index
    %0 = vector.load %arg1[%c0, %c0_0] : memref<8x16xbf16, #tpu.memory_space<vmem>>, vector<8x16xbf16>
    %c0_1 = arith.constant 0 : index
    %c0_2 = arith.constant 0 : index
    %1 = vector.load %arg2[%c0_1, %c0_2] : memref<16x32xbf16, #tpu.memory_space<vmem>>, vector<16x32xbf16>
    %cst = arith.constant dense<0.000000e+00> : vector<8x32xf32>
    %2 = tpu.matmul %0, %1, %cst {dimension_numbers = #tpu.dot_dimension_numbers<[1], [0], [0], [1], [0, 0, 1, 1], [], []>} : vector<8x16xbf16>, vector<16x32xbf16>, vector<8x32xf32> -> vector<8x32xf32>
    %c0_3 = arith.constant 0 : index
    %c0_4 = arith.constant 0 : index
    %3 = vector.load %arg3[%c0_3, %c0_4] : memref<1x32xf32, #tpu.memory_space<vmem>>, vector<1x32xf32>
    %4 = vector.broadcast %3 : vector<1x32xf32> to vector<8x32xf32>
    %5 = arith.addf %2, %4 : vector<8x32xf32>
    %cst_5 = arith.constant 0.000000e+00 : f32
    %6 = vector.broadcast %cst_5 : f32 to vector<8x32xf32>
    %7 = arith.maximumf %5, %6 : vector<8x32xf32>
    %8 = arith.truncf %7 : vector<8x32xf32> to vector<8x32xbf16>
    %c0_6 = arith.constant 0 : index
    %c0_7 = arith.constant 0 : index
    %9 = vector.load %arg4[%c0_6, %c0_7] : memref<32x32xbf16, #tpu.memory_space<vmem>>, vector<32x32xbf16>
    %cst_8 = arith.constant dense<0.000000e+00> : vector<8x32xf32>
    %10 = tpu.matmul %8, %9, %cst_8 {dimension_numbers = #tpu.dot_dimension_numbers<[1], [0], [0], [1], [0, 0, 1, 1], [], []>} : vector<8x32xbf16>, vector<32x32xbf16>, vector<8x32xf32> -> vector<8x32xf32>
    %c0_9 = arith.constant 0 : index
    %c0_10 = arith.constant 0 : index
    %11 = vector.load %arg5[%c0_9, %c0_10] : memref<1x32xf32, #tpu.memory_space<vmem>>, vector<1x32xf32>
    %12 = vector.broadcast %11 : vector<1x32xf32> to vector<8x32xf32>
    %13 = arith.addf %10, %12 : vector<8x32xf32>
    %cst_11 = arith.constant 0.000000e+00 : f32
    %14 = vector.broadcast %cst_11 : f32 to vector<8x32xf32>
    %15 = arith.maximumf %13, %14 : vector<8x32xf32>
    %16 = arith.truncf %15 : vector<8x32xf32> to vector<8x32xbf16>
    %c0_12 = arith.constant 0 : index
    %c0_13 = arith.constant 0 : index
    %17 = vector.load %arg6[%c0_12, %c0_13] : memref<32x4xbf16, #tpu.memory_space<vmem>>, vector<32x4xbf16>
    %cst_14 = arith.constant dense<0.000000e+00> : vector<8x4xf32>
    %18 = tpu.matmul %16, %17, %cst_14 {dimension_numbers = #tpu.dot_dimension_numbers<[1], [0], [0], [1], [0, 0, 1, 1], [], []>} : vector<8x32xbf16>, vector<32x4xbf16>, vector<8x4xf32> -> vector<8x4xf32>
    %c0_15 = arith.constant 0 : index
    %c0_16 = arith.constant 0 : index
    %19 = vector.load %arg7[%c0_15, %c0_16] : memref<1x4xf32, #tpu.memory_space<vmem>>, vector<1x4xf32>
    %20 = vector.broadcast %19 : vector<1x4xf32> to vector<8x4xf32>
    %21 = arith.addf %18, %20 : vector<8x4xf32>
    %cst_17 = arith.constant dense<0xFF800000> : vector<8xf32>
    %22 = vector.multi_reduction <maximumf>, %21, %cst_17 [1] : vector<8x4xf32> to vector<8xf32>
    %23 = vector.shape_cast %22 : vector<8xf32> to vector<8x1xf32>
    %24 = vector.broadcast %23 : vector<8x1xf32> to vector<8x4xf32>
    %25 = arith.subf %21, %24 : vector<8x4xf32>
    %26 = math.exp %25 : vector<8x4xf32>
    %cst_18 = arith.constant dense<0.000000e+00> : vector<8xf32>
    %27 = vector.multi_reduction <add>, %26, %cst_18 [1] : vector<8x4xf32> to vector<8xf32>
    %28 = vector.shape_cast %27 : vector<8xf32> to vector<8x1xf32>
    %29 = tpu.reciprocal %28 {approx = true} : vector<8x1xf32> -> vector<8x1xf32>
    %30 = vector.broadcast %29 : vector<8x1xf32> to vector<8x4xf32>
    %31 = arith.mulf %26, %30 : vector<8x4xf32>
    %c0_19 = arith.constant 0 : index
    %c0_20 = arith.constant 0 : index
    %32 = vector.load %arg8[%c0_19, %c0_20] : memref<8x4xf32, #tpu.memory_space<vmem>>, vector<8x4xf32>
    tpu.vector_store %arg8[%c0_19, %c0_20], %31 {strides = array<i32>} : memref<8x4xf32, #tpu.memory_space<vmem>>, vector<8x4xf32>,
    return
  }
  func.func @transform_0(%arg0: i32) -> (i32, i32) {
    %c0_i32 = arith.constant 0 : i32
    %c0_i32_0 = arith.constant 0 : i32
    return %arg0, %c0_i32 : i32, i32
  }
  func.func @transform_1(%arg0: i32) -> (i32, i32) {
    %c0_i32 = arith.constant 0 : i32
    %c0_i32_0 = arith.constant 0 : i32
    %c0_i32_1 = arith.constant 0 : i32
    return %c0_i32, %c0_i32_0 : i32, i32
  }
  func.func @transform_2(%arg0: i32) -> (i32, i32) {
    %c0_i32 = arith.constant 0 : i32
    %c0_i32_0 = arith.constant 0 : i32
    %c0_i32_1 = arith.constant 0 : i32
    return %c0_i32, %c0_i32_0 : i32, i32
  }
  func.func @transform_3(%arg0: i32) -> (i32, i32) {
    %c0_i32 = arith.constant 0 : i32
    %c0_i32_0 = arith.constant 0 : i32
    %c0_i32_1 = arith.constant 0 : i32
    return %c0_i32, %c0_i32_0 : i32, i32
  }
  func.func @transform_4(%arg0: i32) -> (i32, i32) {
    %c0_i32 = arith.constant 0 : i32
    %c0_i32_0 = arith.constant 0 : i32
    %c0_i32_1 = arith.constant 0 : i32
    return %c0_i32, %c0_i32_0 : i32, i32
  }
  func.func @transform_5(%arg0: i32) -> (i32, i32) {
    %c0_i32 = arith.constant 0 : i32
    %c0_i32_0 = arith.constant 0 : i32
    %c0_i32_1 = arith.constant 0 : i32
    return %c0_i32, %c0_i32_0 : i32, i32
  }
  func.func @transform_6(%arg0: i32) -> (i32, i32) {
    %c0_i32 = arith.constant 0 : i32
    %c0_i32_0 = arith.constant 0 : i32
    %c0_i32_1 = arith.constant 0 : i32
    return %c0_i32, %c0_i32_0 : i32, i32
  }
  func.func @transform_7(%arg0: i32) -> (i32, i32) {
    %c0_i32 = arith.constant 0 : i32
    %c0_i32_0 = arith.constant 0 : i32
    return %arg0, %c0_i32 : i32, i32
  }
}

</mosaic_0001>

<bundles_post_ra>
// kernel: tpu_custom_call.1
= control target key start
LH: loop header
LB: loop body
LE: loop exit
PB: predicated region body
PF: predicated region fallthrough
CT: control target
= control target key end

     0   :  { %12 = vsyncpa [#allocation3], 0  ;;  %s351_s0 = inlined_call_operand.hbm [shape: bf16[8,16], index: 0, kind: input, shape index: {}]   ;;  %s352_s1 = inlined_call_operand.hbm [shape: bf16[16,32], index: 1, kind: input, shape index: {}]   ;;  %s353_s2 = inlined_call_operand.vmem [shape: f32[1,32], index: 2, kind: input, shape index: {}]   ;;  %s354_s3 = inlined_call_operand.vmem [shape: bf16[32,32], index: 3, kind: input, shape index: {}]   ;;  %s355_s4 = inlined_call_operand.vmem [shape: f32[1,32], index: 4, kind: input, shape index: {}]   ;;  %s356_s5 = inlined_call_operand.vmem [shape: bf16[32,4], index: 5, kind: input, shape index: {}]   ;;  %s357_s6 = inlined_call_operand.vmem [shape: f32[1,4], index: 6, kind: input, shape index: {}]   ;;  %s358_s7 = inlined_call_operand.vmem [shape: f32[8,4], index: 7, kind: output, shape index: {}]  }
   0x1   :  { %s19_s26 = sshll.u32 %s351_s0, 4  ;;  %s20_s26 = int_to_ptr.hbm [resolvable:$true] %s19_s26 }
   0x2   :  { %13 = vsyncpa [#allocation5], 0  ;;  %s274_s27 = smov [#allocation2]   ;;  %s29_s8 = sshll.u32 %s352_s1, 4  ;;  %s30_s8 = int_to_ptr.hbm [resolvable:$true] %s29_s8 }
   0x3   :  { %s21_s28 = sshll.u32 %s274_s27, 4  ;;  %s275_s9 = smov [#allocation4]   ;;  %s22_s28 = int_to_ptr.vmem [resolvable:$true] %s21_s28 }
   0x4   :  { %24 = dma.hbm_to_vmem [thread:$0]  %s20_s26, 64, %s22_s28, [#allocation3]  }
   0x5   :  { %s31_s10 = sshll.u32 %s275_s9, 4  ;;  %s276_s11 = smov 64   ;;  %s32_s10 = int_to_ptr.vmem [resolvable:$true] %s31_s10 }
   0x6   :  { %s277_s12 = smov 4  }
   0x7   :  { %37 = dma.hbm_to_vmem [thread:$0]  %s30_s8, 128, %s32_s10, [#allocation5], %s276_s11, %s276_s11, %s277_s12  }
   0x8   :  { %270 = dma.done.wait [#allocation3], 64  }
   0x9   :  { %271 = vsyncadd [#allocation3], 4294967232 }
   0xa   :  { %272 = dma.done.wait [#allocation5], 128  }
   0xb   :  { %273 = vsyncadd [#allocation5], 4294967168  ;;  %v206_v0 = vld [vmem:[#allocation4] sm:$0xff]  ;;  %v57_v1 = vld [vmem:[#allocation2] sm:$0xf]  ;;  %vm70_vm0 = vcmask 130048  }
   0xc   :  { %81 = vmatpush.bf16.msra.mxu0 %v206_v0  ;;  %v208_v2 = vld [vmem:[%s354_s3 + $0x8] sm:$0xff]  ;;  %v207_v3 = vld [vmem:[%s354_s3] sm:$0xff]  ;;  %vm109_vm1 = vcmask 261120   ;;  %vm164_vm2 = vcmask 31744  }
   0xd   :  { %119 = vmatpush.bf16.msra.mxu1 %v208_v2  ;;  %v215_v4 = vld [vmem:[%s353_s2] ss:$0 sm:$0xff]  ;;  %v210_v10 = vld [vmem:[%s356_s5 + $0x8] sm:$0xff] }
   0xe   :  { %157 = vmatpush.bf16.msra.mxu2 %v210_v10  ;;  %v209_v11 = vld [vmem:[%s356_s5] sm:$0xff] }
   0xf   :  { %187 = vmatmul.msk.bf16.vlgmr.msra.gmra.mxu0 %vm70_vm0, %v57_v1  ;;  %v216_v12 = vld [vmem:[%s355_s4] ss:$0 sm:$0xff] }
  0x10   :  { %v217_v18 = vld [vmem:[%s357_s6] ss:$0 sm:$0xff] }
  0x11   :  { %120 = vmatpush.bf16.msra.mxu1 %v207_v3 }
  0x12   :  { %158 = vmatpush.bf16.msra.mxu2 %v209_v11 }
  0x8c   :  { %v83_v5 = vpop.f32.mrf.mxu0 }
  0x8d   :  { %v84_v6 = vadd.f32 %v215_v4, %v83_v5 }
  0x8f   :  { %v87_v7 = vmax.f32 %v84_v6, 0.0 }
  0x91   :  { %v88_v8 = vpack.c.bf16 %v87_v7, %v87_v7 }
  0x93   :  { %196 = vmatmul.msk.bf16.vlgmr.msra.gmra.mxu1 %vm109_vm1, %v88_v8 }
  0x94   :  { %v85_v9 = vpop.f32.mrf.mxu0 }
 0x110   :  { %v122_v13 = vpop.f32.mrf.mxu1 }
 0x111   :  { %v123_v14 = vadd.f32 %v216_v12, %v122_v13 }
 0x113   :  { %v126_v15 = vmax.f32 %v123_v14, 0.0 }
 0x115   :  { %v127_v16 = vpack.c.bf16 %v126_v15, %v126_v15 }
 0x117   :  { %205 = vmatmul.msk.bf16.vlgmr.msra.gmra.mxu2 %vm109_vm1, %v127_v16 }
 0x118   :  { %v124_v17 = vpop.f32.mrf.mxu1 }
 0x19a   :  { %v160_v19 = vpop.f32.mrf.mxu2 }
 0x19b   :  { %v161_v20 = vadd.f32 %v217_v18, %v160_v19 }
 0x19d   :  { %v165_v21 = vsel %vm164_vm2, %v161_v20, -inf }
 0x19e   :  { %166 = vmax.xlane.f32.xlu0 %v165_v21 }
 0x1a2   :  { %v162_v22 = vpop.f32.mrf.mxu2 }
 0x211   :  { %v167_v23 = vpop.xlane.xlu0 %166 }
 0x212   :  { %v168_v24 = vsub.f32 %v161_v20, %v167_v23 }
 0x214   :  { %v169_v25 = vmul.f32 1.442695, %v168_v24 }
 0x216   :  { %218 = vpow2.f32 %v169_v25 }
 0x21c   :  { %v219_v26 = vpop.eup %218 }
 0x21d   :  { %v171_v27 = vsel %vm164_vm2, %v219_v26, 0.0 }
 0x21e   :  { %172 = vadd.xlane.f32.xlu0 %v171_v27 }
 0x291   :  { %v173_v28 = vpop.xlane.xlu0 %172 }
 0x292   :  { %220 = vrcp.f32 %v173_v28 }
 0x298   :  { %v221_v29 = vpop.eup %220 }
 0x299   :  { %v175_v30 = vmul.f32 %v221_v29, %v219_v26 }
 0x29b   :  { %176 = vst.msk [vmem:[%s358_s7] sm:$0xff] %vm164_vm2, %v175_v30 }
 0x29c   :  { %181 = vsyncpa [#allocation3], 1 }
 0x29d   :  { %182 = vsyncpa [#allocation5], 1 }

</bundles_post_ra>
